<compile_context>
chip_gen: v5e
topology: v5e:2x2
jax: 0.10.0
libtpu: 0.0.40
codegen_flags: <defaults>
</compile_context>

<pallas_src>
import functools

import jax
import jax.numpy as jnp
from jax import lax
from jax.experimental import pallas as pl
from jax.experimental.pallas import tpu as pltpu

BS = 8                    # spatial block size used by BlockCopy
PIX = BS * BS             # pixels per block


def _round_up(a, m):
    return (a + m - 1) // m * m


def _vmem_budget_bytes():
    """Per-generation scoped-VMEM budget (leaves headroom for compiler scratch)."""
    cap = 64 * 1024 * 1024
    try:
        info = pltpu.get_tpu_info()
        cap = int(getattr(info, "vmem_capacity_bytes", cap))
    except Exception:
        pass
    # ~40 MiB on v7x (64 MiB/TC), ~80 MiB on v5e/v6e (128 MiB/TC)
    return min(cap * 5 // 8, 96 * 1024 * 1024)


# --------------------------------------------------------------------------
# layout glue (to_blocks / combine equivalents; plain XLA transposes)
# --------------------------------------------------------------------------
def _nchw_to_policy_layout(x):
    # (n, c, h, w) -> (c*PIX, nb): features on sublanes, blocks on lanes
    n, c, h, w = x.shape
    gh, gw = h // BS, w // BS
    xb = x.reshape(n, c, gh, BS, gw, BS)
    xb = xb.transpose(1, 3, 5, 0, 2, 4)          # (c, r, col, n, gh, gw)
    return xb.reshape(c * PIX, n * gh * gw)


def _nchw_to_cs_layout(x):
    # (n, c, h, w) -> (c, nb*PIX): channels on sublanes, block-pixels on lanes
    n, c, h, w = x.shape
    gh, gw = h // BS, w // BS
    xb = x.reshape(n, c, gh, BS, gw, BS)
    xb = xb.transpose(1, 0, 2, 4, 3, 5)          # (c, n, gh, gw, r, col)
    return xb.reshape(c, n * gh * gw * PIX)


def _cs_to_nchw(y, n, h, w):
    # (c, nb*PIX) -> (n, c, h, w)
    c = y.shape[0]
    gh, gw = h // BS, w // BS
    yb = y.reshape(c, n, gh, gw, BS, BS)
    yb = yb.transpose(1, 0, 2, 4, 3, 5)          # (n, c, gh, r, gw, col)
    return yb.reshape(n, c, h, w)


# --------------------------------------------------------------------------
# tile-size selection (per-generation VMEM budget, keep >=2 grid steps)
# --------------------------------------------------------------------------
def _pick_policy_tile(nb, fdim, tile_budget):
    if nb <= 256:
        return _round_up(nb, 8)                      # single tile (full-dim rule)
    per_lane = 2 * 2 * fdim * 4                      # 2 inputs, double-buffered, f32
    cap = max(128, (tile_budget // per_lane) // 128 * 128)
    half = _round_up((nb + 1) // 2, 128)             # keep >= 2 grid steps (megacore)
    return max(128, min(cap, 4096, half))


def _pick_combine_tile(nb, cin, cout, tile_budget):
    if nb <= 4:
        return _round_up(nb, 2)
    per_block = (cin + 2 * cout) * PIX * 4 + PIX     # x + prev + out (f32) + mask (i8)
    cap = max(2, tile_budget // (2 * per_block))     # double-buffered
    half = _round_up((nb + 1) // 2, 2)               # keep >= 2 grid steps (megacore)
    return max(2, min(cap, 512, half))


# --------------------------------------------------------------------------
# policy kernel: per-block L1 frame difference -> execution grid (lane-dense)
# --------------------------------------------------------------------------
def _policy_kernel(x_ref, xp_ref, m_ref, *, threshold):
    d = jnp.abs(x_ref[...] - xp_ref[...])            # (cin*PIX, tbp)
    s = jnp.sum(d, axis=0, keepdims=True)            # (1, tbp)  lane-major
    m_ref[...] = (s > threshold).astype(jnp.int32)


def policy_forward(x_pol, xprev_pol, threshold):
    """x_pol, xprev_pol: (cin*PIX, nb) f32 -> grid (nb,) int32."""
    fdim, nb = x_pol.shape
    budget = _vmem_budget_bytes()
    tbp = _pick_policy_tile(nb, fdim, budget // 3)
    nb_p = _round_up(nb, tbp)
    if nb_p != nb:
        pad = nb_p - nb
        x_pol = jnp.pad(x_pol, ((0, 0), (0, pad)))
        xprev_pol = jnp.pad(xprev_pol, ((0, 0), (0, pad)))
    nt = nb_p // tbp

    mask = pl.pallas_call(
        functools.partial(_policy_kernel, threshold=threshold),
        out_shape=jax.ShapeDtypeStruct((1, nb_p), jnp.int32),
        grid=(nt,),
        in_specs=[
            pl.BlockSpec((fdim, tbp), lambda t: (0, t)),
            pl.BlockSpec((fdim, tbp), lambda t: (0, t)),
        ],
        out_specs=pl.BlockSpec((1, tbp), lambda t: (0, t)),
        compiler_params=pltpu.CompilerParams(
            dimension_semantics=("parallel",),
            vmem_limit_bytes=budget,
        ),
    )(x_pol, xprev_pol)
    return mask[0, :nb]


# --------------------------------------------------------------------------
# base_model (1x1 conv + ReLU) + block-copy combine kernel
#   - tbc blocks (tbc*64 lanes) per grid step, channels-on-sublane tiles
#   - one MXU matmul per tile, one full-tile select + unmasked store
#   - per-block skip via a lane-dense int8 per-pixel mask
#   - x DMA redirected for fully-skipped tiles via a scalar-prefetched
#     source-index array (fetched data is fully discarded -> safe)
# --------------------------------------------------------------------------
def _combine_kernel(xs_ref, x_ref, prev_ref, m_ref, w_ref, b_ref, o_ref):
    del xs_ref                                      # consumed only by the x index_map
    keep = m_ref[...] != 0                          # (1, lanes) lane-dense
    y = jnp.dot(w_ref[...], x_ref[...],             # (cout, lanes): one MXU matmul
                preferred_element_type=jnp.float32)
    y = jnp.maximum(y + b_ref[...], 0.0)            # bias + ReLU, sublane-dense VPU
    o_ref[...] = jnp.where(keep, y, prev_ref[...])  # single full-tile unmasked store


def model_and_combine(grid_blocks, x_cs, prev_cs, w, b):
    """grid_blocks (nb,) i32; x_cs (cin, nb*PIX); prev_cs (cout, nb*PIX)."""
    cin, m = x_cs.shape
    cout = prev_cs.shape[0]
    nb = grid_blocks.shape[0]
    assert m == nb * PIX

    budget = _vmem_budget_bytes()
    tbc = _pick_combine_tile(nb, cin, cout, budget // 3)
    nb_p = _round_up(nb, tbc)
    mp = nb_p * PIX
    nt = nb_p // tbc
    lanes = tbc * PIX                                # multiple of 128

    g_pad = jnp.pad(grid_blocks.astype(jnp.int32), (0, nb_p - nb))
    if mp != m:
        x_cs = jnp.pad(x_cs, ((0, 0), (0, mp - m)))
        prev_cs = jnp.pad(prev_cs, ((0, 0), (0, mp - m)))
    # per-pixel keep mask, int8 (4x less HBM traffic than int32)
    mask_px = jnp.repeat(g_pad.astype(jnp.int8), PIX).reshape(1, mp)

    # x-tile DMA redirection: a tile with no executed block re-uses the last
    # fetched x tile (its data is fully discarded by the select).
    # Invariant: the redirected index always points at a valid tile of the same
    # read-only array; with ("parallel",) on v7x each core simply re-fetches at
    # its first iteration (extra DMA, never a correctness issue).
    gt = g_pad.reshape(nt, tbc)
    any_exec = jnp.any(gt != 0, axis=1)
    ar = jnp.arange(nt, dtype=jnp.int32)
    xsrc = jnp.maximum(lax.cummax(jnp.where(any_exec, ar, -1), axis=0), 0)
    xsrc = xsrc.astype(jnp.int32)

    wt = w.T                                         # (cout, cin)
    b2 = b.reshape(cout, 1)

    out = pl.pallas_call(
        _combine_kernel,
        out_shape=jax.ShapeDtypeStruct((cout, mp), jnp.float32),
        grid_spec=pltpu.PrefetchScalarGridSpec(
            num_scalar_prefetch=1,
            grid=(nt,),
            in_specs=[
                pl.BlockSpec((cin, lanes), lambda t, xs: (0, xs[t])),    # x
                pl.BlockSpec((cout, lanes), lambda t, xs: (0, t)),       # prev
                pl.BlockSpec((1, lanes), lambda t, xs: (0, t)),          # mask (i8)
                pl.BlockSpec((cout, cin), lambda t, xs: (0, 0)),         # w^T (once)
                pl.BlockSpec((cout, 1), lambda t, xs: (0, 0)),           # bias (once)
            ],
            out_specs=pl.BlockSpec((cout, lanes), lambda t, xs: (0, t)),
        ),
        compiler_params=pltpu.CompilerParams(
            dimension_semantics=("parallel",),
            vmem_limit_bytes=budget,
        ),
    )(xsrc, x_cs, prev_cs, mask_px, wt, b2)
    return out[:, :m]


# --------------------------------------------------------------------------
# one jitted frame step (no host sync inside)
# --------------------------------------------------------------------------
@functools.partial(jax.jit, static_argnames=("threshold", "first_frame"))
def _blockcopy_step(w, b, x_nchw, prev_x_pol, prev_out_cs, *, threshold,
                    first_frame):
    n, _, h, ww = x_nchw.shape
    nb = n * (h // BS) * (ww // BS)

    x_pol = _nchw_to_policy_layout(x_nchw)
    x_cs = _nchw_to_cs_layout(x_nchw)

    if first_frame:
        grid_blocks = jnp.ones((nb,), jnp.int32)       # first frame: run all
    else:
        grid_blocks = policy_forward(x_pol, prev_x_pol, threshold)

    out_cs = model_and_combine(grid_blocks, x_cs, prev_out_cs, w, b)
    out_nchw = _cs_to_nchw(out_cs, n, h, ww)
    num_exec = jnp.sum(grid_blocks)                    # stays on device
    return out_nchw, out_cs, x_pol, grid_blocks, num_exec


# --------------------------------------------------------------------------
# BlockCopyModel wrapper (stateful, mirrors the PyTorch module's forward)
# --------------------------------------------------------------------------
class BlockCopyModelPallas:
    """JAX/Pallas re-implementation of blockcopy.BlockCopyModel._forward_blockcopy.

    base_model is a synthetic 1x1 conv + ReLU; the policy is a deterministic
    per-block frame-difference threshold (the "information gain" heuristic).
    """

    def __init__(self, w, b, block_size=BS, threshold=1.0, train_interval=4):
        assert block_size == BS
        self.is_blockcopy_manager = True
        self.w = jnp.asarray(w, jnp.float32)           # (cin, cout)
        self.b = jnp.asarray(b, jnp.float32)           # (cout,)
        self.block_size = block_size
        self.threshold = float(threshold)
        self.train_interval = train_interval
        self.block_temporal_features = None
        self.reset_temporal()

    def reset_temporal(self):
        self.clip_length = 0
        self.block_temporal_features = None
        self.policy_meta = {
            "inputs": None,
            "outputs": None,
            "outputs_prev": None,
            "grid": None,
            "num_exec": None,
        }

    def forward(self, x_nchw):
        return self._forward_blockcopy(x_nchw)

    def _forward_blockcopy(self, x_nchw):
        self.clip_length += 1
        n, cin, h, w_ = x_nchw.shape
        cout = self.w.shape[1]
        nb = n * (h // BS) * (w_ // BS)

        first = self.policy_meta["inputs"] is None
        if first:
            prev_x_pol = jnp.zeros((cin * PIX, nb), jnp.float32)
            prev_out_cs = jnp.zeros((cout, nb * PIX), jnp.float32)
        else:
            prev_x_pol = self.policy_meta["inputs"]
            prev_out_cs = self.policy_meta["outputs"]

        out_nchw, out_cs, x_pol, grid_blocks, num_exec = _blockcopy_step(
            self.w, self.b, x_nchw, prev_x_pol, prev_out_cs,
            threshold=self.threshold, first_frame=first)

        # TODO(synk): process_temporal_features / block_temporal_features has no
        # equivalent here (synthetic stateless base_model); frame_state likewise.
        self.policy_meta["inputs"] = x_pol
        self.policy_meta["outputs_prev"] = self.policy_meta["outputs"]
        self.policy_meta["outputs"] = out_cs            # blocked (cout, nb*PIX)
        self.policy_meta["grid"] = grid_blocks
        self.policy_meta["num_exec"] = num_exec         # device scalar (no sync)

        # TODO(synk): self.policy.optim (RL policy training every train_interval
        # frames) is a training-time optimizer step, not translated to Pallas.
        return out_nchw


# --------------------------------------------------------------------------
if __name__ == "__main__":
    key = jax.random.PRNGKey(0)
    n, cin, hh, wwp = 2, 4, 16, 16
    cout = 8
    nb = n * (hh // BS) * (wwp // BS)

    k1, k2, k3 = jax.random.split(key, 3)
    w = jax.random.normal(k1, (cin, cout), jnp.float32) * 0.1
    bpar = jax.random.normal(k2, (cout,), jnp.float32) * 0.1

    model = BlockCopyModelPallas(w, bpar, block_size=BS, threshold=1.0)

    # frame 1 of the clip: everything executes
    x1 = jax.random.normal(k3, (n, cin, hh, wwp), jnp.float32)
    out1 = jax.block_until_ready(model.forward(x1))

    # frame 2: only the top-left 8x8 spatial block of each image changes
    x2 = x1.at[:, :, 0:BS, 0:BS].add(1.0)
    out2 = jax.block_until_ready(model.forward(x2))
    grid2 = model.policy_meta["grid"]

    # ---------------- plain-JAX reference ----------------
    def to_blocks(x):                       # (n,c,h,w) -> (nb, PIX, c)
        nn, c, h, w_ = x.shape
        gh, gw = h // BS, w_ // BS
        xb = x.reshape(nn, c, gh, BS, gw, BS).transpose(0, 2, 4, 3, 5, 1)
        return xb.reshape(nn * gh * gw, PIX, c)

    def from_blocks(xb, nn, h, w_):
        c = xb.shape[-1]
        gh, gw = h // BS, w_ // BS
        x = xb.reshape(nn, gh, gw, BS, BS, c).transpose(0, 5, 1, 3, 2, 4)
        return x.reshape(nn, c, h, w_)

    def ref_forward(x, prev_blocks, grid):
        xb = to_blocks(x)
        y = jnp.maximum(jnp.einsum("bpc,cd->bpd", xb, w) + bpar[None, None, :], 0.0)
        ob = jnp.where(grid[:, None, None] != 0, y, prev_blocks)
        return from_blocks(ob, n, hh, wwp), ob

    ref1, ref1_blocks = ref_forward(
        x1, jnp.zeros((nb, PIX, cout), jnp.float32), jnp.ones((nb,), jnp.int32))
    ref2, _ = ref_forward(x2, ref1_blocks, grid2)

    ne = int(jnp.sum(grid2))                 # host readback only in the test
    assert 0 < ne < nb, "expected a mix of executed and copied blocks"
    assert jnp.allclose(out1, ref1, atol=1e-4, rtol=1e-4)
    assert jnp.allclose(out2, ref2, atol=1e-4, rtol=1e-4)
    print("KERNEL_OK")
</pallas_src>

<mosaic_0001>
module attributes {stable_mosaic.version = 11 : i64} {
  func.func @_combine_kernel(%arg0: i32, %arg1: memref<2xi32, #tpu.memory_space<smem>>, %arg2: memref<4x256xf32, #tpu.memory_space<vmem>>, %arg3: memref<8x256xf32, #tpu.memory_space<vmem>>, %arg4: memref<1x256xi8, #tpu.memory_space<vmem>>, %arg5: memref<8x4xf32, #tpu.memory_space<vmem>>, %arg6: memref<8x1xf32, #tpu.memory_space<vmem>>, %arg7: memref<8x256xf32, #tpu.memory_space<vmem>>) attributes {dimension_semantics = [#tpu.dimension_semantics<parallel>], iteration_bounds = array<i64: 2>, scalar_prefetch = 1 : i64, scratch_operands = 0 : i64, tpu.core_type = #tpu.core_type<tc>, window_params = [{transform_indices = @transform_0, window_bounds = array<i64: 4, 256>}, {transform_indices = @transform_1, window_bounds = array<i64: 8, 256>}, {transform_indices = @transform_2, window_bounds = array<i64: 1, 256>}, {pipeline_mode = #tpu.pipeline_mode<synchronous>, transform_indices = @transform_3, window_bounds = array<i64: 8, 4>}, {pipeline_mode = #tpu.pipeline_mode<synchronous>, transform_indices = @transform_4, window_bounds = array<i64: 8, 1>}, {transform_indices = @transform_5, window_bounds = array<i64: 8, 256>}]} {
    %c0 = arith.constant 0 : index
    %c0_0 = arith.constant 0 : index
    %0 = vector.load %arg4[%c0, %c0_0] : memref<1x256xi8, #tpu.memory_space<vmem>>, vector<1x256xi8>
    %c0_i8 = arith.constant 0 : i8
    %1 = vector.broadcast %c0_i8 : i8 to vector<1x256xi8>
    %2 = arith.cmpi ne, %0, %1 : vector<1x256xi8>
    %c0_1 = arith.constant 0 : index
    %c0_2 = arith.constant 0 : index
    %3 = vector.load %arg5[%c0_1, %c0_2] : memref<8x4xf32, #tpu.memory_space<vmem>>, vector<8x4xf32>
    %c0_3 = arith.constant 0 : index
    %c0_4 = arith.constant 0 : index
    %4 = vector.load %arg2[%c0_3, %c0_4] : memref<4x256xf32, #tpu.memory_space<vmem>>, vector<4x256xf32>
    %cst = arith.constant dense<0.000000e+00> : vector<8x256xf32>
    %5 = tpu.matmul %3, %4, %cst {dimension_numbers = #tpu.dot_dimension_numbers<[1], [0], [0], [1], [0, 0, 1, 1], [], []>} : vector<8x4xf32>, vector<4x256xf32>, vector<8x256xf32> -> vector<8x256xf32>
    %c0_5 = arith.constant 0 : index
    %c0_6 = arith.constant 0 : index
    %6 = vector.load %arg6[%c0_5, %c0_6] : memref<8x1xf32, #tpu.memory_space<vmem>>, vector<8x1xf32>
    %7 = vector.broadcast %6 : vector<8x1xf32> to vector<8x256xf32>
    %8 = arith.addf %5, %7 : vector<8x256xf32>
    %cst_7 = arith.constant 0.000000e+00 : f32
    %9 = vector.broadcast %cst_7 : f32 to vector<8x256xf32>
    %10 = arith.maximumf %8, %9 : vector<8x256xf32>
    %c0_8 = arith.constant 0 : index
    %c0_9 = arith.constant 0 : index
    %11 = vector.load %arg3[%c0_8, %c0_9] : memref<8x256xf32, #tpu.memory_space<vmem>>, vector<8x256xf32>
    %12 = vector.shape_cast %2 : vector<1x256xi1> to vector<1x256xi1>
    %13 = vector.broadcast %12 : vector<1x256xi1> to vector<8x256xi1>
    %14 = arith.select %13, %10, %11 : vector<8x256xi1>, vector<8x256xf32>
    %c0_10 = arith.constant 0 : index
    %c0_11 = arith.constant 0 : index
    %15 = vector.load %arg7[%c0_10, %c0_11] : memref<8x256xf32, #tpu.memory_space<vmem>>, vector<8x256xf32>
    tpu.vector_store %arg7[%c0_10, %c0_11], %14 {strides = array<i32>} : memref<8x256xf32, #tpu.memory_space<vmem>>, vector<8x256xf32>,
    return
  }
  func.func @transform_0(%arg0: i32, %arg1: memref<2xi32, #tpu.memory_space<smem>>) -> (i32, i32) {
    %0 = arith.index_cast %arg0 : i32 to index
    %1 = memref.load %arg1[%0] : memref<2xi32, #tpu.memory_space<smem>>
    %c0_i32 = arith.constant 0 : i32
    %c0_i32_0 = arith.constant 0 : i32
    return %c0_i32, %1 : i32, i32
  }
  func.func @transform_1(%arg0: i32, %arg1: memref<2xi32, #tpu.memory_space<smem>>) -> (i32, i32) {
    %c0_i32 = arith.constant 0 : i32
    %c0_i32_0 = arith.constant 0 : i32
    return %c0_i32, %arg0 : i32, i32
  }
  func.func @transform_2(%arg0: i32, %arg1: memref<2xi32, #tpu.memory_space<smem>>) -> (i32, i32) {
    %c0_i32 = arith.constant 0 : i32
    %c0_i32_0 = arith.constant 0 : i32
    return %c0_i32, %arg0 : i32, i32
  }
  func.func @transform_3(%arg0: i32, %arg1: memref<2xi32, #tpu.memory_space<smem>>) -> (i32, i32) {
    %c0_i32 = arith.constant 0 : i32
    %c0_i32_0 = arith.constant 0 : i32
    %c0_i32_1 = arith.constant 0 : i32
    return %c0_i32, %c0_i32_0 : i32, i32
  }
  func.func @transform_4(%arg0: i32, %arg1: memref<2xi32, #tpu.memory_space<smem>>) -> (i32, i32) {
    %c0_i32 = arith.constant 0 : i32
    %c0_i32_0 = arith.constant 0 : i32
    %c0_i32_1 = arith.constant 0 : i32
    return %c0_i32, %c0_i32_0 : i32, i32
  }
  func.func @transform_5(%arg0: i32, %arg1: memref<2xi32, #tpu.memory_space<smem>>) -> (i32, i32) {
    %c0_i32 = arith.constant 0 : i32
    %c0_i32_0 = arith.constant 0 : i32
    return %c0_i32, %arg0 : i32, i32
  }
}

</mosaic_0001>

<bundles_post_ra>
// kernel: _blockcopy_step.1
= control target key start
LH: loop header
LB: loop body
LE: loop exit
PB: predicated region body
PF: predicated region fallthrough
CT: control target
= control target key end

     0   :  { %s500_s24 = smov [#allocation3]   ;;  %s569_s0 = inlined_call_operand.vmem [shape: s32[2], index: 0, kind: input, shape index: {}]   ;;  %s570_s1 = inlined_call_operand.vmem [shape: f32[4,512], index: 1, kind: input, shape index: {}]   ;;  %s571_s2 = inlined_call_operand.vmem [shape: f32[8,512], index: 2, kind: input, shape index: {}]   ;;  %s572_s3 = inlined_call_operand.vmem [shape: s8[1,512], index: 3, kind: input, shape index: {}]   ;;  %s573_s4 = inlined_call_operand.vmem [shape: f32[8,4], index: 4, kind: input, shape index: {}]   ;;  %s574_s5 = inlined_call_operand.vmem [shape: f32[8,1], index: 5, kind: input, shape index: {}]   ;;  %s575_s6 = inlined_call_operand.vmem [shape: f32[8,512], index: 6, kind: output, shape index: {}]  }
   0x1   :  { %s12_s23 = sshll.u32 %s569_s0, 4  ;;  %s13_s23 = int_to_ptr.vmem [resolvable:$true] %s12_s23 }
   0x2   :  { %15 = dma.vmem_to_smem %s13_s23, 16, %s500_s24, [#allocation2] }
   0x3   :  { %494 = dma.done.wait [#allocation2], 16 }
   0x4   :  { %495 = vsyncadd [#allocation2], 4294967280 }
   0x5   :  { %18 = sfence }
   0x6   :  { %s540_s25 = smov 0  }
   0x7 LB: > { %s449_s26 = sadd.s32 4294967295, %s498_s25   ;;  %p453_p0 = scmp.ge.s32.totalorder %s498_s25, 1  ;;  %s498_s25 = sphi %s540_s25, %s24_s25  }
   0x8   : > { %p222_p1 = scmp.lt.s32.totalorder %s498_s25, 3 }
   0xa   : > { %p223_p2 = pnand %p453_p0, %p222_p1 }
   0xb   : > { %s260_s0 = sld [smem:[#allocation3 + %s449_s26]] (!%p223_p2)  ;;  %s456_s12 = sshll.u32 (!%p223_p2), %s449_s26, 1 }
   0xc   : > { %226 = sbr.rel (%p223_p2) target bundleno = 166 (0xa6), region = 40  ;;  %p269_p4 = scmp.lt.s32.totalorder (!%p223_p2), %s456_s12, 3 }
  0x11   : > { %v291_v0 = vld [vmem:[%s574_s5] sm:$0xff]  ;;  %v501_v1 = vmov 0   ;;  %s454_s29 = sshll.u32 %s260_s0, 1  ;;  %vm305_vm0 = vcmask 1043456   ;;  %vm301_vm1 = vcmask 31744   ;;  %s579_s12 = smov (!%p269_p4, %s456_s12), 3 }
  0x12   : > { %477 = vset.pattern.permute.xlu0 %v501_v1  ;;  %p262_p3 = scmp.lt.s32.totalorder %s454_s29, 3  ;;  %v289_v3 = vld [vmem:[%s573_s4] sm:$0xff]  ;;  %s277_s15 = scalar_lea.vmem %s572_s3, %s579_s12 }
  0x13   : > { %294 = vperm.xlu0 %477, %v291_v0   ;;  %v287_v6 = vld [vmem:[%s277_s15] sm:$0x3]  ;;  %s457_s16 = sshll.u32 %s579_s12, 3 }
  0x14   : > { %s577_s29 = smov (!%p262_p3, %s454_s29), 3  ;;  %vm288_vm2 = vnez %v287_v6  ;;  %s272_s19 = scalar_lea.vmem %s571_s2, %s457_s16 }
  0x15   : > { %s455_s30 = sshll.u32 %s577_s29, 2  ;;  %v354_v7 = vsel %vm288_vm2, 16843009, %v501_v1  ;;  %v352_v21 = vld [vmem:[%s272_s19] sm:$0xff]  ;;  %v353_v22 = vld [vmem:[%s272_s19 + $0x8] sm:$0xff]  ;;  %s283_s22 = scalar_lea.vmem %s575_s6, %s457_s16 }
  0x16   : > { %s265_s9 = scalar_lea.vmem %s570_s1, %s455_s30  ;;  %v355_v8 = vunpack.c.0.s8 %v354_v7 }
  0x17   : > { %v290_v2 = vld [vmem:[%s265_s9] sm:$0xff] }
  0x18   : > { %298 = vst [vmem:[#allocation1] ss:$2 sm:$0xff] %v290_v2  ;;  %vm356_vm3 = vcmp.ne.s32.totalorder %v355_v8, 0 }
  0x19   : > { %v357_v9 = vsel %vm356_vm3, 1, %v501_v1 }
  0x1a   : > { %v358_v10 = vperm.slane %v357_v9, 0  ;;  %v359_v11 = vperm.slane %v357_v9, 4 }
  0x1c   : > { %vm360_vm4 = vcmp.ne.s32.totalorder %v358_v10, 0  ;;  %vm361_vm5 = vcmp.ne.s32.totalorder %v359_v11, 0 }
  0x1d   : > { %v362_v12 = vsel %vm360_vm4, 1, %v501_v1  ;;  %v363_v13 = vsel %vm361_vm5, 1, %v501_v1 }
  0x1e   : > { %v364_v15 = vperm.slane %v362_v12, 0  ;;  %v365_v16 = vperm.slane %v363_v13, 0 }
  0x1f   : > { %v299_v4 = vld.sshfl [vmem:[#allocation1] sm:$0xff pattern:$0x75316420]  ;;  %v300_v5 = vld.sshfl [vmem:[#allocation1 + $0x8] sm:$0xff pattern:$0x75316420] }
  0x20   : > { %461 = vmatpush.msk.msra.mxu0 %vm305_vm0, %v299_v4  ;;  %463 = vmatpush.msk.msra.mxu1 %vm305_vm0, %v300_v5  ;;  %vm366_vm6 = vcmp.eq.s32.totalorder %v364_v15, 1  ;;  %vm367_vm7 = vcmp.eq.s32.totalorder %v365_v16, 1 }
  0x21   : > { %462 = vmatmul.msk.f32.vlgmr.msra.gmra.mxu0 %vm301_vm1, %v289_v3  ;;  %464 = vmatmul.msk.f32.vlgmr.msra.gmra.mxu1 %vm301_vm1, %v289_v3 }
  0x85   : > { %v295_v14 = vpop.permute.xlu0 %294 }
  0x9e   : > { %v327_v17 = vpop.f32.mrf.mxu0  ;;  %v347_v18 = vpop.f32.mrf.mxu1 }
  0x9f   : > { %v328_v19 = vadd.f32 %v327_v17, %v295_v14  ;;  %v348_v20 = vadd.f32 %v347_v18, %v295_v14 }
  0xa1   : > { %v350_v23 = vmax.f32 %v328_v19, 0.0  ;;  %v351_v24 = vmax.f32 %v348_v20, 0.0 }
  0xa3   : > { %v368_v25 = vsel %vm366_vm6, %v350_v23, %v352_v21  ;;  %v369_v26 = vsel %vm367_vm7, %v351_v24, %v353_v22 }
  0xa4   : > { %370 = vst [vmem:[%s283_s22] sm:$0xff] %v368_v25 }
  0xa5   : > { %371 = vst [vmem:[%s283_s22 + $0x8] sm:$0xff] %v369_v26 }
  0xa6 PF: > { %s24_s25 = sadd.s32 1, %s498_s25  }
  0xa7   : > { %p21_p5 = scmp.ge.s32.totalorder %s24_s25, 4  }
  0xa9   :  { %23 = sbr.rel (!%p21_p5) target bundleno = 7 (0x7), region = 76 }

</bundles_post_ra>
